<compile_context>
chip_gen: v6e
topology: v6e:2x2x1
jax: 0.10.0
libtpu: 0.0.40
codegen_flags: <defaults>
</compile_context>

<pallas_src>
import math
import functools

import jax
import jax.numpy as jnp
from jax import lax
from jax.experimental import pallas as pl
from jax.experimental.pallas import tpu as pltpu


def _round_up(x, mult):
    return ((x + mult - 1) // mult) * mult


def _choose_tile_c(d_padded, c_lane, bytes_per_elem,
                   target_tile_bytes=8 << 20, wstream_budget=20 << 20):
    """Pick a lane-dense (multiple-of-128) class-tile width that fits VMEM."""
    t = (target_tile_bytes // (d_padded * bytes_per_elem)) // 128 * 128
    t = max(128, min(int(t), 8192, c_lane))
    # Keep the double-buffered weight stream within the scoped-VMEM budget.
    while t > 128 and 2 * d_padded * t * bytes_per_elem > wstream_budget:
        t -= 128
    return t


def _arc_margin_kernel(x_ref, wt_ref, label_ref, out_ref, *,
                       s, cos_m, sin_m, th, mm, easy_margin,
                       tile_c, w_prenormalized):
    x = x_ref[...]            # (Bp, Dp)     f32
    wt = wt_ref[...]          # (Dp, TILE_C) f32 or bf16, already transposed
    labels = label_ref[...]   # (Bp, 1)      i32

    eps = 1e-12
    # Row-wise L2 normalization of x: one EUP rsqrt per row.
    inv_xn = lax.rsqrt(jnp.sum(x * x, axis=-1, keepdims=True) + eps * eps)
    x_n = x * inv_xn

    if w_prenormalized:
        w_n = wt                                   # normalized in the wrapper
    else:
        wf = wt.astype(jnp.float32)
        inv_wn = lax.rsqrt(jnp.sum(wf * wf, axis=0, keepdims=True) + eps * eps)
        w_n = wf * inv_wn                          # (Dp, TILE_C) f32

    # cosine = x_n @ w_n -> (Bp, TILE_C); f32 accumulation on the MXU,
    # RHS already (D, TILE_C) so no transpose is needed.
    cosine = jnp.dot(x_n.astype(w_n.dtype), w_n,
                     preferred_element_type=jnp.float32)

    sine = jnp.sqrt(jnp.clip(1.0 - cosine * cosine, 0.0, 1.0))
    phi = cosine * cos_m - sine * sin_m
    if easy_margin:
        phi = jnp.where(cosine > 0.0, phi, cosine)
    else:
        phi = jnp.where(cosine > th, phi, cosine - mm)

    # one_hot via global-column iota vs label compare (replaces torch scatter_).
    col0 = pl.program_id(0) * tile_c
    col_ids = col0 + lax.broadcasted_iota(jnp.int32, cosine.shape, 1)
    one_hot = col_ids == labels                    # (Bp, 1) broadcasts to (Bp, TILE_C)

    out_ref[...] = jnp.where(one_hot, phi, cosine) * s


def arc_margin_product(x, weight, label, *, s=30.0, m=0.5, easy_margin=False,
                       weight_dtype=None, tile_c=None):
    """x: (B, D) f32, weight: (C, D) f32, label: (B,) int -> (B, C) f32 logits."""
    x = jnp.asarray(x, jnp.float32)
    weight = jnp.asarray(weight, jnp.float32)
    B, D = x.shape
    C, D2 = weight.shape
    assert D == D2

    w_dt = jnp.dtype(weight_dtype) if weight_dtype is not None else jnp.dtype(jnp.float32)
    w_prenormalized = w_dt != jnp.dtype(jnp.float32)

    # --- pad to TPU-friendly shapes ------------------------------------------
    Bp = _round_up(B, 8)              # sublane multiple
    Dp = _round_up(D, 128)            # lane-dense contraction dim
    c_lane = _round_up(C, 128)
    if tile_c is None:
        tile_c = _choose_tile_c(Dp, c_lane, w_dt.itemsize)
    assert tile_c % 128 == 0
    Cp = _round_up(C, tile_c)

    x_p = jnp.pad(x, ((0, Bp - B), (0, Dp - D)))
    w_p = jnp.pad(weight, ((0, Cp - C), (0, Dp - D)))          # (Cp, Dp) f32

    eps = 1e-12
    if w_prenormalized:
        # Hoist the x-independent per-class L2 normalization; stream narrow dtype.
        w_p = w_p / jnp.maximum(jnp.linalg.norm(w_p, axis=-1, keepdims=True), eps)
    # Pre-transpose so the MXU sees a (Dp, TILE_C) RHS (no in-kernel vxpose).
    # TODO(synk): at real ArcFace sizes store the weight as (D, C) so this
    # transpose never materializes in HBM.
    wt = w_p.T.astype(w_dt)                                    # (Dp, Cp)

    label_p = jnp.pad(jnp.asarray(label, jnp.int32).reshape(-1), (0, Bp - B))
    label2d = label_p.reshape(Bp, 1)

    kernel = functools.partial(
        _arc_margin_kernel,
        s=float(s), cos_m=math.cos(m), sin_m=math.sin(m),
        th=math.cos(math.pi - m), mm=math.sin(math.pi - m) * m,
        easy_margin=easy_margin, tile_c=tile_c,
        w_prenormalized=w_prenormalized)

    grid = (pl.cdiv(Cp, tile_c),)
    out_p = pl.pallas_call(
        kernel,
        out_shape=jax.ShapeDtypeStruct((Bp, Cp), jnp.float32),
        grid=grid,
        in_specs=[
            pl.BlockSpec((Bp, Dp), lambda j: (0, 0)),       # x: resident
            pl.BlockSpec((Dp, tile_c), lambda j: (0, j)),   # weight: streamed over C
            pl.BlockSpec((Bp, 1), lambda j: (0, 0)),        # labels: resident
        ],
        out_specs=pl.BlockSpec((Bp, tile_c), lambda j: (0, j)),
        compiler_params=pltpu.CompilerParams(
            dimension_semantics=("parallel",),
            vmem_limit_bytes=32 * 1024 * 1024),
    )(x_p, wt, label2d)

    return out_p[:B, :C]


def _reference(x, weight, label, *, s=30.0, m=0.5, easy_margin=False):
    """Pure-JAX reference mirroring the PyTorch forward."""
    eps = 1e-12
    xn = x / jnp.maximum(jnp.linalg.norm(x, axis=-1, keepdims=True), eps)
    wn = weight / jnp.maximum(jnp.linalg.norm(weight, axis=-1, keepdims=True), eps)
    cosine = xn @ wn.T
    sine = jnp.sqrt(jnp.clip(1.0 - cosine ** 2, 0.0, 1.0))
    phi = cosine * math.cos(m) - sine * math.sin(m)
    if easy_margin:
        phi = jnp.where(cosine > 0, phi, cosine)
    else:
        phi = jnp.where(cosine > math.cos(math.pi - m), phi,
                        cosine - math.sin(math.pi - m) * m)
    one_hot = jax.nn.one_hot(label, cosine.shape[1], dtype=cosine.dtype)
    return (one_hot * phi + (1.0 - one_hot) * cosine) * s


if __name__ == "__main__":
    key = jax.random.PRNGKey(0)

    # --- test 1: single-tile path (C == TILE_C) ------------------------------
    B, Din, Cout = 8, 32, 128
    k1, k2, k3, key = jax.random.split(key, 4)
    limit = math.sqrt(6.0 / (Din + Cout))            # xavier_uniform_
    w1 = jax.random.uniform(k2, (Cout, Din), jnp.float32, -limit, limit)
    x1 = jax.random.normal(k1, (B, Din), jnp.float32)
    l1 = jax.random.randint(k3, (B,), 0, Cout, jnp.int32)

    out1 = jax.block_until_ready(arc_margin_product(x1, w1, l1))
    ref1 = _reference(x1, w1, l1)
    assert out1.shape == (B, Cout)
    assert jnp.allclose(out1, ref1, atol=1e-3, rtol=1e-3), "f32 single-tile mismatch"

    # --- test 2: multi-tile C grid + B/D/C padding paths ----------------------
    B2, Din2, Cout2 = 5, 40, 300
    k1, k2, k3, key = jax.random.split(key, 4)
    limit2 = math.sqrt(6.0 / (Din2 + Cout2))
    w2 = jax.random.uniform(k2, (Cout2, Din2), jnp.float32, -limit2, limit2)
    x2 = jax.random.normal(k1, (B2, Din2), jnp.float32)
    l2 = jax.random.randint(k3, (B2,), 0, Cout2, jnp.int32)

    out2 = jax.block_until_ready(
        arc_margin_product(x2, w2, l2, tile_c=128))  # grid of 3 class tiles
    ref2 = _reference(x2, w2, l2)
    assert out2.shape == (B2, Cout2)
    assert jnp.allclose(out2, ref2, atol=1e-3, rtol=1e-3), "tiled/padded mismatch"

    # --- test 3: bf16 weight streaming (memory-bound fast path) ---------------
    out3 = jax.block_until_ready(
        arc_margin_product(x1, w1, l1, weight_dtype=jnp.bfloat16))
    assert out3.shape == (B, Cout)
    assert bool(jnp.all(jnp.isfinite(out3)))
    assert float(jnp.max(jnp.abs(out3 - ref1))) < 2.0, "bf16 path out of tolerance"

    print("KERNEL_OK")
</pallas_src>

<mosaic_0001>
module attributes {stable_mosaic.version = 11 : i64} {
  func.func @_arc_margin_kernel(%arg0: i32, %arg1: memref<8x128xf32, #tpu.memory_space<vmem>>, %arg2: memref<128x128xf32, #tpu.memory_space<vmem>>, %arg3: memref<8x1xi32, #tpu.memory_space<vmem>>, %arg4: memref<8x128xf32, #tpu.memory_space<vmem>>) attributes {dimension_semantics = [#tpu.dimension_semantics<parallel>], iteration_bounds = array<i64: 1>, scalar_prefetch = 0 : i64, scratch_operands = 0 : i64, tpu.core_type = #tpu.core_type<tc>, window_params = [{pipeline_mode = #tpu.pipeline_mode<synchronous>, transform_indices = @transform_0, window_bounds = array<i64: 8, 128>}, {transform_indices = @transform_1, window_bounds = array<i64: 128, 128>}, {pipeline_mode = #tpu.pipeline_mode<synchronous>, transform_indices = @transform_2, window_bounds = array<i64: 8, 1>}, {transform_indices = @transform_3, window_bounds = array<i64: 8, 128>}]} {
    %c0 = arith.constant 0 : index
    %c0_0 = arith.constant 0 : index
    %0 = vector.load %arg1[%c0, %c0_0] : memref<8x128xf32, #tpu.memory_space<vmem>>, vector<8x128xf32>
    %c0_1 = arith.constant 0 : index
    %c0_2 = arith.constant 0 : index
    %1 = vector.load %arg2[%c0_1, %c0_2] : memref<128x128xf32, #tpu.memory_space<vmem>>, vector<128x128xf32>
    %c0_3 = arith.constant 0 : index
    %c0_4 = arith.constant 0 : index
    %2 = vector.load %arg3[%c0_3, %c0_4] : memref<8x1xi32, #tpu.memory_space<vmem>>, vector<8x1xi32>
    %3 = arith.mulf %0, %0 : vector<8x128xf32>
    %cst = arith.constant dense<0.000000e+00> : vector<8xf32>
    %4 = vector.multi_reduction <add>, %3, %cst [1] : vector<8x128xf32> to vector<8xf32>
    %5 = vector.shape_cast %4 : vector<8xf32> to vector<8x1xf32>
    %cst_5 = arith.constant 1.000000e-24 : f32
    %6 = vector.broadcast %cst_5 : f32 to vector<8x1xf32>
    %7 = arith.addf %5, %6 : vector<8x1xf32>
    %8 = math.rsqrt %7 : vector<8x1xf32>
    %9 = vector.broadcast %8 : vector<8x1xf32> to vector<8x128xf32>
    %10 = arith.mulf %0, %9 : vector<8x128xf32>
    %11 = arith.mulf %1, %1 : vector<128x128xf32>
    %cst_6 = arith.constant dense<0.000000e+00> : vector<128xf32>
    %12 = vector.multi_reduction <add>, %11, %cst_6 [0] : vector<128x128xf32> to vector<128xf32>
    %13 = vector.shape_cast %12 : vector<128xf32> to vector<1x128xf32>
    %cst_7 = arith.constant 1.000000e-24 : f32
    %14 = vector.broadcast %cst_7 : f32 to vector<1x128xf32>
    %15 = arith.addf %13, %14 : vector<1x128xf32>
    %16 = math.rsqrt %15 : vector<1x128xf32>
    %17 = vector.broadcast %16 : vector<1x128xf32> to vector<128x128xf32>
    %18 = arith.mulf %1, %17 : vector<128x128xf32>
    %cst_8 = arith.constant dense<0.000000e+00> : vector<8x128xf32>
    %19 = tpu.matmul %10, %18, %cst_8 {dimension_numbers = #tpu.dot_dimension_numbers<[1], [0], [0], [1], [0, 0, 1, 1], [], []>} : vector<8x128xf32>, vector<128x128xf32>, vector<8x128xf32> -> vector<8x128xf32>
    %20 = arith.mulf %19, %19 : vector<8x128xf32>
    %cst_9 = arith.constant 1.000000e+00 : f32
    %21 = vector.broadcast %cst_9 : f32 to vector<8x128xf32>
    %22 = arith.subf %21, %20 : vector<8x128xf32>
    %cst_10 = arith.constant 0.000000e+00 : f32
    %cst_11 = arith.constant 1.000000e+00 : f32
    %23 = vector.broadcast %cst_10 : f32 to vector<8x128xf32>
    %24 = arith.maximumf %23, %22 : vector<8x128xf32>
    %25 = vector.broadcast %cst_11 : f32 to vector<8x128xf32>
    %26 = arith.minimumf %25, %24 : vector<8x128xf32>
    %27 = math.sqrt %26 : vector<8x128xf32>
    %cst_12 = arith.constant 0.87758255 : f32
    %28 = vector.broadcast %cst_12 : f32 to vector<8x128xf32>
    %29 = arith.mulf %19, %28 : vector<8x128xf32>
    %cst_13 = arith.constant 0.47942555 : f32
    %30 = vector.broadcast %cst_13 : f32 to vector<8x128xf32>
    %31 = arith.mulf %27, %30 : vector<8x128xf32>
    %32 = arith.subf %29, %31 : vector<8x128xf32>
    %cst_14 = arith.constant -0.87758255 : f32
    %33 = vector.broadcast %cst_14 : f32 to vector<8x128xf32>
    %34 = arith.cmpf ogt, %19, %33 : vector<8x128xf32>
    %cst_15 = arith.constant 0.239712775 : f32
    %35 = vector.broadcast %cst_15 : f32 to vector<8x128xf32>
    %36 = arith.subf %19, %35 : vector<8x128xf32>
    %37 = arith.select %34, %32, %36 : vector<8x128xi1>, vector<8x128xf32>
    %c128_i32 = arith.constant 128 : i32
    %38 = arith.muli %arg0, %c128_i32 : i32
    %39 = tpu.iota {dimensions = array<i32: 1>} : vector<8x128xi32>
    %40 = vector.broadcast %38 : i32 to vector<8x128xi32>
    %41 = arith.addi %40, %39 : vector<8x128xi32>
    %42 = vector.broadcast %2 : vector<8x1xi32> to vector<8x128xi32>
    %43 = arith.cmpi eq, %41, %42 : vector<8x128xi32>
    %44 = arith.select %43, %37, %19 : vector<8x128xi1>, vector<8x128xf32>
    %cst_16 = arith.constant 3.000000e+01 : f32
    %45 = vector.broadcast %cst_16 : f32 to vector<8x128xf32>
    %46 = arith.mulf %44, %45 : vector<8x128xf32>
    %c0_17 = arith.constant 0 : index
    %c0_18 = arith.constant 0 : index
    %47 = vector.load %arg4[%c0_17, %c0_18] : memref<8x128xf32, #tpu.memory_space<vmem>>, vector<8x128xf32>
    tpu.vector_store %arg4[%c0_17, %c0_18], %46 {strides = array<i32>} : memref<8x128xf32, #tpu.memory_space<vmem>>, vector<8x128xf32>,
    return
  }
  func.func @transform_0(%arg0: i32) -> (i32, i32) {
    %c0_i32 = arith.constant 0 : i32
    %c0_i32_0 = arith.constant 0 : i32
    %c0_i32_1 = arith.constant 0 : i32
    return %c0_i32, %c0_i32_0 : i32, i32
  }
  func.func @transform_1(%arg0: i32) -> (i32, i32) {
    %c0_i32 = arith.constant 0 : i32
    %c0_i32_0 = arith.constant 0 : i32
    return %c0_i32, %arg0 : i32, i32
  }
  func.func @transform_2(%arg0: i32) -> (i32, i32) {
    %c0_i32 = arith.constant 0 : i32
    %c0_i32_0 = arith.constant 0 : i32
    %c0_i32_1 = arith.constant 0 : i32
    return %c0_i32, %c0_i32_0 : i32, i32
  }
  func.func @transform_3(%arg0: i32) -> (i32, i32) {
    %c0_i32 = arith.constant 0 : i32
    %c0_i32_0 = arith.constant 0 : i32
    return %c0_i32, %arg0 : i32, i32
  }
}

</mosaic_0001>

<bundles_post_ra>
// kernel: tpu_custom_call.1
= control target key start
LH: loop header
LB: loop body
LE: loop exit
PB: predicated region body
PF: predicated region fallthrough
CT: control target
= control target key end

     0   :  { %8 = vsyncpa [#allocation3], 0  ;;  %s434_s0 = inlined_call_operand.vmem [shape: f32[8,128], index: 0, kind: input, shape index: {}]   ;;  %s435_s1 = inlined_call_operand.hbm [shape: f32[128,128], index: 1, kind: input, shape index: {}]   ;;  %s436_s2 = inlined_call_operand.vmem [shape: s32[8,1], index: 2, kind: input, shape index: {}]   ;;  %s437_s3 = inlined_call_operand.hbm [shape: f32[8,128], index: 3, kind: output, shape index: {}]  }
   0x1   :  { %9 = vsyncpa [#allocation4], 0  ;;  %s333_s12 = smov [#allocation2]  }
   0x2   :  { %s17_s13 = sshll.u32 %s333_s12, 4  ;;  %s18_s13 = int_to_ptr.vmem [resolvable:$true] %s17_s13 }
   0x3   :  { %s297_s14 = scalar_lea.vmem %s18_s13, 2048  ;;  %p302_p1 = scmp.lt.s32.totalorder %s18_s13, %s18_s13 }
   0x4   :  { %p298_p0 = scmp.ne.s32.totalorder %s18_s13, %s297_s14  ;;  %p303_p2 = scmp.lt.s32.totalorder %s297_s14, %s297_s14 }
   0x6   :  { %p304_p3 = por %p303_p2, %p302_p1 }
   0x8   :  { %p305_p4 = pnand %p304_p3, %p298_p0 }
   0xa   :  { %308 = shalt.err (!%p305_p4)
}
   0xb   :  { %s334_s15 = smov 128   ;;  %s335_s16 = smov 8  }
   0xc   :  { %23 = dma.hbm_to_vmem [thread:$0]  %s435_s1, 2048, %s18_s13, [#allocation3], %s334_s15, %s334_s15, %s335_s16  }
   0xd   :  { %329 = dma.done.wait [#allocation3], 2048  }
   0xe   :  { %330 = vsyncadd [#allocation3], 4294965248  ;;  %v336_v0 = vmov 0.0   ;;  %v367_v1 = vld [vmem:[%s434_s0] sm:$0xff]  ;;  %v371_v3 = vld [vmem:[#allocation2 + $0x8] sm:$0xff]  ;;  %vm337_vm0 = vmmov 0  }
   0xf   :  { %240 = vmatprep.subr.mxu0 %v336_v0  ;;  %v369_v2 = vld [vmem:[#allocation2] sm:$0xff]  ;;  %v47_v4 = vmul.f32 %v367_v1, %v367_v1  ;;  %v375_v5 = vld [vmem:[#allocation2 + $0x10] sm:$0xff]  ;;  %v377_v6 = vld [vmem:[#allocation2 + $0x18] sm:$0xff]  ;;  %v54_v8 = vmul.f32 %v371_v3, %v371_v3  ;;  %272 = vmatprep.mubr.msk.f32.mxu0 %vm337_vm0, %v336_v0  ;;  %v338_v51 = vmov 0  }
  0x10   :  { %v53_v7 = vmul.f32 %v369_v2, %v369_v2  ;;  %v383_v9 = vld [vmem:[#allocation2 + $0x20] sm:$0xff]  ;;  %v55_v10 = vmul.f32 %v375_v5, %v375_v5  ;;  %v56_v11 = vmul.f32 %v377_v6, %v377_v6  ;;  %v389_v13 = vld [vmem:[#allocation2 + $0x28] sm:$0xff]  ;;  %v393_v16 = vld [vmem:[#allocation2 + $0x30] sm:$0xff]  ;;  %282 = vset.pattern.permute.xlu0 %v338_v51 }
  0x11   :  { %48 = vadd.xlane.f32.xlu0 %v47_v4  ;;  %v57_v14 = vmul.f32 %v383_v9, %v383_v9  ;;  %v58_v17 = vmul.f32 %v389_v13, %v389_v13  ;;  %v397_v19 = vld [vmem:[#allocation2 + $0x38] sm:$0xff]  ;;  %v59_v20 = vmul.f32 %v393_v16, %v393_v16  ;;  %v38_v22 = vld [vmem:[#allocation2 + $0x40] sm:$0xff]  ;;  %v39_v25 = vld [vmem:[#allocation2 + $0x48] sm:$0xff] }
  0x12   :  { %v69_v12 = vadd.f32 %v54_v8, %v53_v7  ;;  %v60_v23 = vmul.f32 %v397_v19, %v397_v19  ;;  %v61_v26 = vmul.f32 %v38_v22, %v38_v22  ;;  %v40_v28 = vld [vmem:[#allocation2 + $0x50] sm:$0xff]  ;;  %v62_v29 = vmul.f32 %v39_v25, %v39_v25  ;;  %v41_v31 = vld [vmem:[#allocation2 + $0x58] sm:$0xff]  ;;  %v42_v34 = vld [vmem:[#allocation2 + $0x60] sm:$0xff] }
  0x13   :  { %v63_v32 = vmul.f32 %v40_v28, %v40_v28  ;;  %v64_v35 = vmul.f32 %v41_v31, %v41_v31  ;;  %v43_v37 = vld [vmem:[#allocation2 + $0x68] sm:$0xff]  ;;  %v65_v38 = vmul.f32 %v42_v34, %v42_v34  ;;  %v44_v40 = vld [vmem:[#allocation2 + $0x70] sm:$0xff]  ;;  %v45_v43 = vld [vmem:[#allocation2 + $0x78] sm:$0xff] }
  0x14   :  { %v70_v15 = vadd.f32 %v69_v12, %v55_v10  ;;  %v66_v41 = vmul.f32 %v43_v37, %v43_v37  ;;  %v67_v44 = vmul.f32 %v44_v40, %v44_v40  ;;  %v68_v46 = vmul.f32 %v45_v43, %v45_v43  ;;  %v46_v50 = vld [vmem:[%s436_s2] sm:$0xff]  ;;  %s339_s2 = smov [#allocation5]  }
  0x15   :  { %s213_s21 = sshll.u32 %s339_s2, 4  ;;  %s214_s21 = int_to_ptr.vmem [resolvable:$true] %s213_s21 }
  0x16   :  { %v71_v18 = vadd.f32 %v70_v15, %v56_v11  ;;  %s309_s22 = scalar_lea.vmem %s214_s21, 128  ;;  %p314_p6 = scmp.lt.s32.totalorder %s214_s21, %s214_s21 }
  0x17   :  { %p310_p5 = scmp.ne.s32.totalorder %s214_s21, %s309_s22  ;;  %p315_p7 = scmp.lt.s32.totalorder %s309_s22, %s309_s22 }
  0x18   :  { %v72_v21 = vadd.f32 %v71_v18, %v57_v14 }
  0x19   :  { %p316_p8 = por %p315_p7, %p314_p6 }
  0x1a   :  { %v73_v24 = vadd.f32 %v72_v21, %v58_v17 }
  0x1b   :  { %p317_p9 = pnand %p316_p8, %p310_p5 }
  0x1c   :  { %v74_v27 = vadd.f32 %v73_v24, %v59_v20 }
  0x1e   :  { %v75_v30 = vadd.f32 %v74_v27, %v60_v23 }
  0x20   :  { %v76_v33 = vadd.f32 %v75_v30, %v61_v26 }
  0x22   :  { %v77_v36 = vadd.f32 %v76_v33, %v62_v29 }
  0x24   :  { %v78_v39 = vadd.f32 %v77_v36, %v63_v32 }
  0x26   :  { %v79_v42 = vadd.f32 %v78_v39, %v64_v35 }
  0x27   :  { %201 = vperm.xlu0 %282, %v46_v50  }
  0x28   :  { %v80_v45 = vadd.f32 %v79_v42, %v65_v38 }
  0x2a   :  { %v81_v47 = vadd.f32 %v80_v45, %v66_v41 }
  0x2c   :  { %v82_v48 = vadd.f32 %v81_v47, %v67_v44 }
  0x2e   :  { %v83_v49 = vadd.f32 %v82_v48, %v68_v46 }
  0x30   :  { %v84_v52 = vrot.slane %v83_v49, 4 }
  0x32   :  { %v85_v53 = vadd.f32 %v84_v52, %v83_v49 }
  0x34   :  { %v86_v54 = vrot.slane %v85_v53, 2 }
  0x36   :  { %v87_v55 = vadd.f32 %v86_v54, %v85_v53 }
  0x38   :  { %v88_v56 = vrot.slane %v87_v55, 1 }
  0x3a   :  { %v89_v57 = vadd.f32 %v88_v56, %v87_v55 }
  0x3c   :  { %v90_v58 = vadd.f32 1e-24, %v89_v57 }
  0x3e   :  { %283 = vrsqrt.f32 %v90_v58 }
  0x4b   :  { %v284_v59 = vpop.eup %283 }
  0x4c   :  { %v107_v60 = vmul.f32 %v284_v59, %v45_v43  ;;  %v106_v61 = vmul.f32 %v284_v59, %v44_v40  ;;  %v105_v62 = vmul.f32 %v284_v59, %v43_v37  ;;  %v104_v63 = vmul.f32 %v284_v59, %v42_v34 }
  0x4d   :  { %v103_v4 = vmul.f32 %v284_v59, %v41_v31  ;;  %v102_v7 = vmul.f32 %v284_v59, %v40_v28  ;;  %v101_v8 = vmul.f32 %v284_v59, %v39_v25  ;;  %v100_v10 = vmul.f32 %v284_v59, %v38_v22 }
  0x4e   :  { %241 = vmatpush3.msra.mxu0 %v107_v60  ;;  %v99_v11 = vmul.f32 %v284_v59, %v397_v19  ;;  %v98_v12 = vmul.f32 %v284_v59, %v393_v16  ;;  %v97_v14 = vmul.f32 %v284_v59, %v389_v13  ;;  %v96_v15 = vmul.f32 %v284_v59, %v383_v9 }
  0x4f   :  { %242 = vmatprep.subr.mxu0 %v336_v0  ;;  %v95_v17 = vmul.f32 %v284_v59, %v377_v6  ;;  %v94_v16 = vmul.f32 %v284_v59, %v375_v5  ;;  %v93_v13 = vmul.f32 %v284_v59, %v371_v3  ;;  %v92_v9 = vmul.f32 %v284_v59, %v369_v2 }
  0x50   :  { %243 = vmatpush3.msra.mxu0 %v106_v61  ;;  %v196_v2 = vlaneseq }
  0x51   :  { %244 = vmatprep.subr.mxu0 %v336_v0 }
  0x52   :  { %245 = vmatpush3.msra.mxu0 %v105_v62  ;;  %v197_v28 = vand.u32 127, %v196_v2 }
  0x53   :  { %246 = vmatprep.subr.mxu0 %v336_v0 }
  0x54   :  { %247 = vmatpush3.msra.mxu0 %v104_v63 }
  0x55   :  { %248 = vmatprep.subr.mxu0 %v336_v0 }
  0x56   :  { %249 = vmatpush3.msra.mxu0 %v103_v4 }
  0x57   :  { %250 = vmatprep.subr.mxu0 %v336_v0 }
  0x58   :  { %251 = vmatpush3.msra.mxu0 %v102_v7 }
  0x59   :  { %252 = vmatprep.subr.mxu0 %v336_v0 }
  0x5a   :  { %253 = vmatpush3.msra.mxu0 %v101_v8 }
  0x5b   :  { %254 = vmatprep.subr.mxu0 %v336_v0 }
  0x5c   :  { %255 = vmatpush3.msra.mxu0 %v100_v10 }
  0x5d   :  { %256 = vmatprep.subr.mxu0 %v336_v0 }
  0x5e   :  { %257 = vmatpush3.msra.mxu0 %v99_v11 }
  0x5f   :  { %258 = vmatprep.subr.mxu0 %v336_v0 }
  0x60   :  { %259 = vmatpush3.msra.mxu0 %v98_v12 }
  0x61   :  { %260 = vmatprep.subr.mxu0 %v336_v0 }
  0x62   :  { %261 = vmatpush3.msra.mxu0 %v97_v14 }
  0x63   :  { %262 = vmatprep.subr.mxu0 %v336_v0 }
  0x64   :  { %263 = vmatpush3.msra.mxu0 %v96_v15 }
  0x65   :  { %264 = vmatprep.subr.mxu0 %v336_v0 }
  0x66   :  { %265 = vmatpush3.msra.mxu0 %v95_v17 }
  0x67   :  { %266 = vmatprep.subr.mxu0 %v336_v0 }
  0x68   :  { %267 = vmatpush3.msra.mxu0 %v94_v16 }
  0x69   :  { %268 = vmatprep.subr.mxu0 %v336_v0 }
  0x6a   :  { %269 = vmatpush3.msra.mxu0 %v93_v13 }
  0x6b   :  { %270 = vmatprep.subr.mxu0 %v336_v0 }
  0x6c   :  { %271 = vmatpush3.msra.mxu0 %v92_v9 }
  0x9a   :  { %v49_v6 = vpop.xlane.xlu0 %48 }
  0x9b   :  { %v50_v18 = vadd.f32 1e-24, %v49_v6 }
  0x9d   :  { %285 = vrsqrt.f32 %v50_v18 }
  0xa2   :  { %v202_v30 = vpop.permute.xlu0 %201 }
  0xa3   :  { %vm203_vm3 = vcmp.eq.s32.totalorder %v197_v28, %v202_v30 }
  0xaa   :  { %v286_v5 = vpop.eup %285 }
  0xab   :  { %v52_v19 = vmul.f32 %v286_v5, %v367_v1 }
  0xad   :  { %273 = vmatmul.mubr.f32.vlgmr.msra.gmra.mxu0 %v52_v19 }
 0x16d   :  { %v174_v20 = vpop.f32.mrf.mxu0 }
 0x16e   :  { %v178_v3 = vmul.f32 %v174_v20, %v174_v20  ;;  %v189_v31 = vmul.f32 0.87758255, %v174_v20  ;;  %v222_v32 = vadd.f32 -0.23971277, %v174_v20  ;;  %vm192_vm4 = vcmp.gt.f32.partialorder %v174_v20, -0.87758255 }
 0x16f   :  { %v274_v21 = vpop.f32.mrf.mxu0 }
 0x170   :  { %v179_v22 = vsub.f32 1.0, %v178_v3 }
 0x172   :  { %v180_v23 = vmax.f32 %v179_v22, 0.0 }
 0x174   :  { %v181_v24 = vmin.f32 %v180_v23, 1.0 }
 0x176   :  { %287 = vrsqrt.f32 %v181_v24  ;;  %vm184_vm1 = vcmp.eq.f32.partialorder %v181_v24, inf  ;;  %v187_v0 = vand.u32 2147483648, %v181_v24  ;;  %vm186_vm2 = vcmp.eq.f32.partialorder %v181_v24, 0.0 }
 0x183   :  { %v288_v25 = vpop.eup %287 }
 0x184   :  { %v183_v26 = vmul.f32 %v288_v25, %v181_v24 }
 0x186   :  { %v185_v27 = vsel %vm184_vm1, %v181_v24, %v183_v26 }
 0x187   :  { %v188_v29 = vsel %vm186_vm2, %v187_v0, %v185_v27 }
 0x188   :  { %v190_v1 = vmul.f32 0.47942555, %v188_v29 }
 0x18a   :  { %v191_v33 = vsub.f32 %v189_v31, %v190_v1 }
 0x18c   :  { %v194_v34 = vsel %vm192_vm4, %v191_v33, %v222_v32 }
 0x18d   :  { %v204_v35 = vsel %vm203_vm3, %v194_v34, %v174_v20 }
 0x18e   :  { %v205_v36 = vmul.f32 30.0, %v204_v35 }
 0x190   :  { %206 = vst [vmem:[#allocation5] sm:$0xff] %v205_v36 }
 0x191   :  { %320 = shalt.err (!%p317_p9)
}
 0x192   :  { %216 = dma.vmem_to_hbm [thread:$0]  %s214_s21, 128, %s437_s3, [#allocation4]  }
 0x193   :  { %331 = dma.done.wait [#allocation4], 128  }
 0x194   :  { %332 = vsyncadd [#allocation4], 4294967168 }
 0x195   :  { %220 = vsyncpa [#allocation3], 1 }
 0x196   :  { %221 = vsyncpa [#allocation4], 1 }

</bundles_post_ra>
